<compile_context>
chip_gen: v5e
topology: v5e:2x2
jax: 0.10.0
libtpu: 0.0.40
codegen_flags: <defaults>
</compile_context>

<pallas_src>
import functools

import jax
import jax.numpy as jnp
from jax.experimental import pallas as pl
from jax.experimental.pallas import tpu as pltpu

ALPHA = 0.25
GAMMA = 5  # integer power -> expanded as x**5 on the final scalar


def _round_up(x, m):
    return ((x + m - 1) // m) * m


def _tpu_vmem_capacity_bytes():
    # Generation-aware budget: v7x = 64 MiB / TensorCore, v5e/v6e = 128 MiB.
    try:
        return int(pltpu.get_tpu_info().vmem_capacity_bytes)
    except Exception:
        return 64 * 1024 * 1024  # conservative fallback (v7x floor)


def _choose_tile_n(n, c_pad, itemsize, vmem_bytes):
    """Row-tile size chosen by bytes, rounded to the dtype sublane multiple."""
    sublane = 16 if itemsize <= 2 else 8
    logits_row = max(1, c_pad * itemsize)
    # A (tile_n, 1) i32 targets block occupies a full (8,128) lane tile per
    # 8 rows in VMEM (512 B/row) even though its HBM traffic is 4 B/row.
    tgt_row_vmem = 512
    target = 6 * 1024 * 1024                              # ~6 MiB logits DMA block
    cap_total = max(4 * 1024 * 1024, vmem_bytes // 4)     # 2x (logits+targets) buffers
    tile_from_target = target // logits_row
    tile_from_cap = cap_total // (2 * (logits_row + tgt_row_vmem))
    tile = min(tile_from_target, tile_from_cap)
    tile = max(sublane, (tile // sublane) * sublane)
    tile = min(tile, _round_up(n, sublane))
    return max(sublane, tile)


def _focal_ce_partial_kernel(logits_ref, targets_ref, out_ref, *,
                             n_rows, grid_per_part):
    """One (TILE_N, C_pad) tile. Accumulates the partition's CE row-sum into a
    resident lane-dense (8,128) output block.

    logits_ref:  (TILE_N, C_pad) input dtype, VMEM (auto-pipelined block)
    targets_ref: (TILE_N, 1) i32, VMEM (auto-pipelined block)
    out_ref:     (8, 128) f32 resident output block (one per partition)
    """
    p = pl.program_id(0)   # partition (parallel -> one per v7x TensorCore)
    i = pl.program_id(1)   # row-block within partition (arbitrary/reduction)

    @pl.when(i == 0)
    def _init():
        out_ref[...] = jnp.zeros_like(out_ref)

    logits = logits_ref[...].astype(jnp.float32)   # in-kernel f32 upcast
    tgt = targets_ref[...]                         # (TILE_N, 1) int32
    tn, c = logits.shape

    # Logical (unclamped) block index -> row-validity mask. Rows past the true
    # N (block overhang) and fully-clamped duplicate tail blocks contribute 0.
    block_idx = p * grid_per_part + i
    row_ids = block_idx * tn + jax.lax.broadcasted_iota(jnp.int32, (tn, 1), 0)
    valid = row_ids < n_rows                       # (TILE_N, 1) bool

    # Numerically stable per-row log-sum-exp.
    m = jnp.max(logits, axis=-1, keepdims=True)
    lse = m + jnp.log(jnp.sum(jnp.exp(logits - m), axis=-1, keepdims=True))

    # Gather the target logit via a static iota compare (no dynamic gather).
    class_ids = jax.lax.broadcasted_iota(jnp.int32, (tn, c), 1)
    picked = jnp.sum(jnp.where(class_ids == tgt, logits, 0.0),
                     axis=-1, keepdims=True)

    # Select (not multiply-by-mask) so NaN/Inf from overhang rows cannot leak.
    ce_rows = jnp.where(valid, lse - picked, 0.0)

    # Accumulate into the resident (8,128) block: every element carries the
    # running partial sum -> full unmasked vreg stores (lane-dense output).
    out_ref[...] += jnp.sum(ce_rows)


@functools.partial(jax.jit, static_argnames=("tile_rows",))
def focal_loss(inputs, targets, *, tile_rows=None):
    """inputs: (N, C) float logits (any float dtype); targets: (N,) class ids."""
    n, c = inputs.shape
    itemsize = jnp.dtype(inputs.dtype).itemsize
    vmem_bytes = _tpu_vmem_capacity_bytes()
    sublane = 16 if itemsize <= 2 else 8

    # Lane-dense class dim: pad C to a multiple of 128 with a large negative
    # fill (contributes exp~=0 to the LSE and can never be a valid target).
    c_pad = _round_up(c, 128)
    if c_pad != c:
        inputs = jnp.pad(inputs, ((0, 0), (0, c_pad - c)),
                         constant_values=-1e30)

    if tile_rows is None:
        tile_n = _choose_tile_n(n, c_pad, itemsize, vmem_bytes)
    else:
        tile_n = max(sublane, (int(tile_rows) // sublane) * sublane)
        tile_n = min(tile_n, _round_up(n, sublane))

    grid_n_total = pl.cdiv(n, tile_n)
    # Split the N reduction across 2 partitions so v7x's two TensorCores each
    # get half (plain sequential loop on single-core v5e/v6e).
    num_parts = 2 if grid_n_total >= 2 else 1
    grid_per_part = pl.cdiv(grid_n_total, num_parts)

    def block_map(p, i):
        # Clamp so any (p, i) step past the real block count re-reads the last
        # block; its rows are masked out in-kernel via the logical row ids.
        return (jnp.minimum(p * grid_per_part + i, grid_n_total - 1), 0)

    targets_2d = targets.astype(jnp.int32).reshape(n, 1)

    out_rows = num_parts * 8
    # VMEM limit tracks the real double-buffered footprint (logits block +
    # lane-padded targets block), capped to ~3/4 of this generation's VMEM.
    tile_vmem = tile_n * c_pad * itemsize + tile_n * 512
    need = 2 * tile_vmem + out_rows * 128 * 4 + (4 << 20)
    vmem_limit = int(min(max(16 << 20, need), (vmem_bytes * 3) // 4))

    kernel = functools.partial(_focal_ce_partial_kernel,
                               n_rows=n, grid_per_part=grid_per_part)
    partials = pl.pallas_call(
        kernel,
        out_shape=jax.ShapeDtypeStruct((out_rows, 128), jnp.float32),
        grid_spec=pltpu.PrefetchScalarGridSpec(
            num_scalar_prefetch=0,
            grid=(num_parts, grid_per_part),
            in_specs=[
                pl.BlockSpec((tile_n, c_pad), block_map),
                pl.BlockSpec((tile_n, 1), block_map),
            ],
            out_specs=pl.BlockSpec((8, 128), lambda p, i: (p, 0)),
        ),
        compiler_params=pltpu.CompilerParams(
            dimension_semantics=("parallel", "arbitrary"),
            vmem_limit_bytes=vmem_limit,
        ),
        cost_estimate=pl.CostEstimate(
            flops=6 * n * c_pad,
            transcendentals=n * c_pad + 2 * n,
            bytes_accessed=n * c_pad * itemsize + n * 4 + out_rows * 128 * 4,
        ),
    )(inputs, targets_2d)

    # Combine per-partition CE sums and apply the module's "reduce then
    # modulate" semantics on the scalar (trivial wrapper-side epilogue).
    ce_sum = jnp.sum(partials.reshape(num_parts, 8, 128)[:, 0, 0])
    bce = ce_sum / jnp.float32(n)
    pt = jnp.exp(-bce)
    return jnp.float32(ALPHA) * ((1.0 - pt) ** GAMMA) * bce


def _focal_loss_ref(inputs, targets):
    """Pure-JAX reference for sanity checking."""
    logp = jax.nn.log_softmax(inputs.astype(jnp.float32), axis=-1)
    ce = -jnp.mean(logp[jnp.arange(inputs.shape[0]), targets])
    pt = jnp.exp(-ce)
    return ALPHA * (1.0 - pt) ** GAMMA * ce


if __name__ == "__main__":
    key = jax.random.PRNGKey(0)
    k1, k2, k3, k4, k5, k6 = jax.random.split(key, 6)

    # Case 1: small f32, single tile, class dim padded 32 -> 128.
    N1, C1 = 8, 32
    x1 = jax.random.normal(k1, (N1, C1), dtype=jnp.float32)
    t1 = jax.random.randint(k2, (N1,), 0, C1, dtype=jnp.int32)
    out1 = focal_loss(x1, t1)
    jax.block_until_ready(out1)
    ref1 = _focal_loss_ref(x1, t1)
    assert jnp.allclose(out1, ref1, rtol=1e-5, atol=1e-6), (out1, ref1)

    # Case 2: bf16 inputs (halved HBM bytes, in-kernel upcast), lane-dense
    # C = 128, auto (byte-sized, 16-row-aligned) tile.
    N2, C2 = 528, 128
    x2 = jax.random.normal(k3, (N2, C2), dtype=jnp.float32).astype(jnp.bfloat16)
    t2 = jax.random.randint(k4, (N2,), 0, C2, dtype=jnp.int32)
    out2 = focal_loss(x2, t2)
    jax.block_until_ready(out2)
    ref2 = _focal_loss_ref(x2, t2)
    assert jnp.allclose(out2, ref2, rtol=1e-5, atol=1e-6), (out2, ref2)

    # Case 3: forced small tile -> multi-block 2-partition grid with a clamped
    # duplicate tail block, a partially-valid last block and C padding 96->128.
    N3, C3 = 1000, 96
    x3 = jax.random.normal(k5, (N3, C3), dtype=jnp.float32)
    t3 = jax.random.randint(k6, (N3,), 0, C3, dtype=jnp.int32)
    out3 = focal_loss(x3, t3, tile_rows=96)
    jax.block_until_ready(out3)
    ref3 = _focal_loss_ref(x3, t3)
    assert jnp.allclose(out3, ref3, rtol=1e-5, atol=1e-6), (out3, ref3)

    print("KERNEL_OK")
</pallas_src>

<mosaic_0001>
module attributes {stable_mosaic.version = 11 : i64} {
  func.func @_focal_ce_partial_kernel(%arg0: i32, %arg1: i32, %arg2: memref<8x128xf32, #tpu.memory_space<vmem>>, %arg3: memref<8x1xi32, #tpu.memory_space<vmem>>, %arg4: memref<8x128xf32, #tpu.memory_space<vmem>>) attributes {dimension_semantics = [#tpu.dimension_semantics<parallel>, #tpu.dimension_semantics<arbitrary>], iteration_bounds = array<i64: 1, 1>, scalar_prefetch = 0 : i64, scratch_operands = 0 : i64, tpu.core_type = #tpu.core_type<tc>, window_params = [{transform_indices = @transform_0, window_bounds = array<i64: 8, 128>}, {transform_indices = @transform_1, window_bounds = array<i64: 8, 1>}, {transform_indices = @transform_2, window_bounds = array<i64: 8, 128>}]} {
    %c0_i32 = arith.constant 0 : i32
    %0 = arith.cmpi eq, %arg1, %c0_i32 : i32
    %1 = arith.extui %0 : i1 to i32
    %c0_i32_0 = arith.constant 0 : i32
    %2 = arith.cmpi ne, %1, %c0_i32_0 : i32
    scf.if %2 {
      %cst_14 = arith.constant 0.000000e+00 : f32
      %40 = vector.broadcast %cst_14 : f32 to vector<8x128xf32>
      %c0_15 = arith.constant 0 : index
      %c0_16 = arith.constant 0 : index
      %41 = vector.load %arg4[%c0_15, %c0_16] : memref<8x128xf32, #tpu.memory_space<vmem>>, vector<8x128xf32>
      tpu.vector_store %arg4[%c0_15, %c0_16], %40 {strides = array<i32>} : memref<8x128xf32, #tpu.memory_space<vmem>>, vector<8x128xf32>,
    } else {
    }
    %c0 = arith.constant 0 : index
    %c0_1 = arith.constant 0 : index
    %3 = vector.load %arg2[%c0, %c0_1] : memref<8x128xf32, #tpu.memory_space<vmem>>, vector<8x128xf32>
    %c0_2 = arith.constant 0 : index
    %c0_3 = arith.constant 0 : index
    %4 = vector.load %arg3[%c0_2, %c0_3] : memref<8x1xi32, #tpu.memory_space<vmem>>, vector<8x1xi32>
    %c1_i32 = arith.constant 1 : i32
    %5 = arith.muli %arg0, %c1_i32 : i32
    %6 = arith.addi %5, %arg1 : i32
    %c8_i32 = arith.constant 8 : i32
    %7 = arith.muli %6, %c8_i32 : i32
    %8 = tpu.iota {dimensions = array<i32: 0>} : vector<8x1xi32>
    %9 = vector.broadcast %7 : i32 to vector<8x1xi32>
    %10 = arith.addi %9, %8 : vector<8x1xi32>
    %c8_i32_4 = arith.constant 8 : i32
    %11 = vector.broadcast %c8_i32_4 : i32 to vector<8x1xi32>
    %12 = arith.cmpi slt, %10, %11 : vector<8x1xi32>
    %cst = arith.constant dense<0xFF800000> : vector<8xf32>
    %13 = vector.multi_reduction <maximumf>, %3, %cst [1] : vector<8x128xf32> to vector<8xf32>
    %14 = vector.shape_cast %13 : vector<8xf32> to vector<8x1xf32>
    %15 = vector.broadcast %14 : vector<8x1xf32> to vector<8x128xf32>
    %16 = arith.subf %3, %15 : vector<8x128xf32>
    %17 = math.exp %16 : vector<8x128xf32>
    %cst_5 = arith.constant dense<0.000000e+00> : vector<8xf32>
    %18 = vector.multi_reduction <add>, %17, %cst_5 [1] : vector<8x128xf32> to vector<8xf32>
    %19 = vector.shape_cast %18 : vector<8xf32> to vector<8x1xf32>
    %20 = math.log %19 : vector<8x1xf32>
    %21 = arith.addf %14, %20 : vector<8x1xf32>
    %22 = tpu.iota {dimensions = array<i32: 1>} : vector<8x128xi32>
    %23 = vector.broadcast %4 : vector<8x1xi32> to vector<8x128xi32>
    %24 = arith.cmpi eq, %22, %23 : vector<8x128xi32>
    %cst_6 = arith.constant 0.000000e+00 : f32
    %25 = vector.broadcast %cst_6 : f32 to vector<8x128xf32>
    %26 = arith.select %24, %3, %25 : vector<8x128xi1>, vector<8x128xf32>
    %cst_7 = arith.constant dense<0.000000e+00> : vector<8xf32>
    %27 = vector.multi_reduction <add>, %26, %cst_7 [1] : vector<8x128xf32> to vector<8xf32>
    %28 = vector.shape_cast %27 : vector<8xf32> to vector<8x1xf32>
    %29 = arith.subf %21, %28 : vector<8x1xf32>
    %cst_8 = arith.constant 0.000000e+00 : f32
    %30 = vector.broadcast %cst_8 : f32 to vector<8x1xf32>
    %31 = arith.select %12, %29, %30 : vector<8x1xi1>, vector<8x1xf32>
    %c0_9 = arith.constant 0 : index
    %c0_10 = arith.constant 0 : index
    %32 = vector.load %arg4[%c0_9, %c0_10] : memref<8x128xf32, #tpu.memory_space<vmem>>, vector<8x128xf32>
    %33 = vector.shape_cast %31 : vector<8x1xf32> to vector<1x8x1xf32>
    %cst_11 = arith.constant dense<0.000000e+00> : vector<1xf32>
    %34 = vector.multi_reduction <add>, %33, %cst_11 [1, 2] : vector<1x8x1xf32> to vector<1xf32>
    %35 = vector.shape_cast %34 : vector<1xf32> to vector<1x1x1xf32>
    %36 = vector.extract %35[0, 0, 0] : f32 from vector<1x1x1xf32>
    %37 = vector.broadcast %36 : f32 to vector<8x128xf32>
    %38 = arith.addf %32, %37 : vector<8x128xf32>
    %c0_12 = arith.constant 0 : index
    %c0_13 = arith.constant 0 : index
    %39 = vector.load %arg4[%c0_12, %c0_13] : memref<8x128xf32, #tpu.memory_space<vmem>>, vector<8x128xf32>
    tpu.vector_store %arg4[%c0_12, %c0_13], %38 {strides = array<i32>} : memref<8x128xf32, #tpu.memory_space<vmem>>, vector<8x128xf32>,
    return
  }
  func.func @transform_0(%arg0: i32, %arg1: i32) -> (i32, i32) {
    %c1_i32 = arith.constant 1 : i32
    %0 = arith.muli %arg0, %c1_i32 : i32
    %1 = arith.addi %0, %arg1 : i32
    %c0_i32 = arith.constant 0 : i32
    %2 = arith.minsi %1, %c0_i32 : i32
    %c0_i32_0 = arith.constant 0 : i32
    %c0_i32_1 = arith.constant 0 : i32
    return %2, %c0_i32_0 : i32, i32
  }
  func.func @transform_1(%arg0: i32, %arg1: i32) -> (i32, i32) {
    %c1_i32 = arith.constant 1 : i32
    %0 = arith.muli %arg0, %c1_i32 : i32
    %1 = arith.addi %0, %arg1 : i32
    %c0_i32 = arith.constant 0 : i32
    %2 = arith.minsi %1, %c0_i32 : i32
    %c0_i32_0 = arith.constant 0 : i32
    %c0_i32_1 = arith.constant 0 : i32
    return %2, %c0_i32_0 : i32, i32
  }
  func.func @transform_2(%arg0: i32, %arg1: i32) -> (i32, i32) {
    %c0_i32 = arith.constant 0 : i32
    %c0_i32_0 = arith.constant 0 : i32
    return %arg0, %c0_i32 : i32, i32
  }
}

</mosaic_0001>

<bundles_post_ra>
// kernel: focal_loss.1
= control target key start
LH: loop header
LB: loop body
LE: loop exit
PB: predicated region body
PF: predicated region fallthrough
CT: control target
= control target key end

     0   :  { %v140_v1 = vmov 0   ;;  %v89_v7 = vlaneseq  ;;  %vm101_vm1 = vcmask 7168   ;;  %s165_s0 = inlined_call_operand.vmem [shape: f32[8,128], index: 0, kind: input, shape index: {}]   ;;  %s166_s1 = inlined_call_operand.vmem [shape: s32[8,1], index: 1, kind: input, shape index: {}]   ;;  %s167_s2 = inlined_call_operand.vmem [shape: f32[8,128], index: 2, kind: output, shape index: {}]  }
   0x1   :  { %v70_v0 = vld [vmem:[%s165_s0] sm:$0xff]  ;;  %135 = vset.pattern.permute.xlu0 %v140_v1 }
   0x2   :  { %79 = vmax.xlane.f32.xlu0 %v70_v0  ;;  %v71_v2 = vld [vmem:[%s166_s1] sm:$0xff]  ;;  %v90_v8 = vand.u32 127, %v89_v7 }
  0x16   :  { %92 = vperm.xlu0 %135, %v71_v2  }
  0x75   :  { %v80_v3 = vpop.xlane.xlu0 %79 }
  0x76   :  { %v81_v4 = vsub.f32 %v70_v0, %v80_v3 }
  0x78   :  { %v82_v5 = vmul.f32 1.442695, %v81_v4 }
  0x7a   :  { %136 = vpow2.f32 %v82_v5 }
  0x80   :  { %v137_v6 = vpop.eup %136 }
  0x81   :  { %84 = vadd.xlane.f32.xlu1 %v137_v6 }
  0x88   :  { %v93_v9 = vpop.permute.xlu0 %92 }
  0x89   :  { %vm94_vm0 = vcmp.eq.s32.totalorder %v90_v8, %v93_v9 }
  0x8a   :  { %v95_v10 = vsel %vm94_vm0, %v70_v0, 0.0 }
  0x8b   :  { %96 = vadd.xlane.f32.xlu1 %v95_v10 }
  0xf4   :  { %v85_v11 = vpop.xlane.xlu1 %84 }
  0xf5   :  { %138 = vlog2.f32 %v85_v11 }
  0xfb   :  { %v139_v12 = vpop.eup %138 }
  0xfc   :  { %v87_v13 = vmul.f32 0.6931472, %v139_v12 }
  0xfe   :  { %v88_v14 = vadd.f32 %v87_v13, %v80_v3  ;;  %v97_v15 = vpop.xlane.xlu1 %96 }
 0x100   :  { %v98_v16 = vsub.f32 %v88_v14, %v97_v15 }
 0x102   :  { %v102_v17 = vsel %vm101_vm1, %v98_v16, 0.0 }
 0x103   :  { %103 = vadd.xlane.f32.xlu2 %v102_v17 }
 0x176   :  { %v104_v18 = vpop.xlane.xlu2 %103 }
 0x177   :  { %v105_v19 = vrot.slane %v104_v18, 4 }
 0x179   :  { %v106_v20 = vadd.f32 %v105_v19, %v104_v18 }
 0x17b   :  { %v107_v21 = vrot.slane %v106_v20, 2 }
 0x17d   :  { %v108_v22 = vadd.f32 %v107_v21, %v106_v20 }
 0x17f   :  { %v109_v23 = vrot.slane %v108_v22, 1 }
 0x181   :  { %v110_v24 = vadd.f32 %v109_v23, %v108_v22 }
 0x183   :  { %131 = vpush %v110_v24 }
 0x1b4   :  { %s132_s0 = spop %131 }
 0x1b5   :  { %v112_v25 = vstv %s132_s0 }
 0x1b6   :  { %114 = vst [vmem:[%s167_s2] sm:$0xff] %v112_v25 }

</bundles_post_ra>
